<compile_context>
chip_gen: v7x
topology: tpu7x:2x2x1
jax: 0.10.0
libtpu: 0.0.40
codegen_flags: <defaults>
</compile_context>

<pallas_src>
import functools

import jax
import jax.numpy as jnp
from jax.experimental import pallas as pl
from jax.experimental.pallas import tpu as pltpu


def _select_channel0_kernel(x_ref, o_ref, *, num_ch, w_tile, wc_total,
                            need_mask, row_chunk):
    """x_ref: (th, num_ch*w_tile) contiguous slab of the (H, W*C) view.
       o_ref: (th, w_tile) channel-0 output tile (lane-dense)."""
    k_len = num_ch * w_tile

    # One-hot selection matrix: sel[k, w] = 1.0 iff k == num_ch * w.
    k_ids = jax.lax.broadcasted_iota(jnp.int32, (k_len, w_tile), 0)
    w_ids = jax.lax.broadcasted_iota(jnp.int32, (k_len, w_tile), 1)
    sel = (k_ids == w_ids * num_ch).astype(jnp.float32)

    if need_mask:
        # Last W-tile is ragged: zero stale lanes so NaN/Inf garbage in the
        # padded region cannot leak through 0-weight MXU products.
        j = pl.program_id(1)
        lane = jax.lax.broadcasted_iota(jnp.int32, (1, k_len), 1)
        valid = (lane + j * k_len) < wc_total

    th = o_ref.shape[0]
    # Chunk the rows so matmul operands stay at a sane vreg footprint while the
    # DMA block itself stays large.
    for m in range(0, th, row_chunk):
        rows = min(row_chunk, th - m)
        x = x_ref[m:m + rows, :].astype(jnp.float32)
        if need_mask:
            x = jnp.where(valid, x, 0.0)
        o_ref[m:m + rows, :] = jax.lax.dot_general(
            x, sel, (((1,), (0,)), ((), ())),
            precision=jax.lax.Precision.HIGHEST,
            preferred_element_type=jnp.float32,
        ).astype(o_ref.dtype)


def _add_color_channel_3d(img, *, block_h, block_w, row_chunk):
    H, W, C = img.shape
    WC = W * C

    # Keep block sizes hardware-legal: rows multiple of 8, lane tile of W a
    # multiple of 128 (so C*tw is also a multiple of 128).
    block_h = max(8, (block_h // 8) * 8)
    block_w = max(128, (block_w // 128) * 128)

    x2 = img.reshape(H, WC)                       # free: row-major contiguous

    tw = W if W <= block_w else block_w           # lane tile of W
    th = H if H <= block_h else block_h           # row tile
    grid = (pl.cdiv(H, th), pl.cdiv(W, tw))
    need_mask = (W % tw) != 0

    kernel = functools.partial(
        _select_channel0_kernel, num_ch=C, w_tile=tw, wc_total=WC,
        need_mask=need_mask, row_chunk=row_chunk)

    itemsize = img.dtype.itemsize
    cost = pl.CostEstimate(
        flops=2 * grid[0] * grid[1] * th * (C * tw) * tw,
        transcendentals=0,
        bytes_accessed=H * WC * itemsize + H * W * itemsize)

    out2 = pl.pallas_call(
        kernel,
        out_shape=jax.ShapeDtypeStruct((H, W), img.dtype),
        grid_spec=pltpu.PrefetchScalarGridSpec(
            num_scalar_prefetch=0,
            grid=grid,
            in_specs=[pl.BlockSpec((th, C * tw), lambda i, j: (i, j))],
            out_specs=pl.BlockSpec((th, tw), lambda i, j: (i, j)),
        ),
        compiler_params=pltpu.CompilerParams(
            dimension_semantics=("parallel", "parallel"),
            vmem_limit_bytes=32 * 1024 * 1024,
        ),
        cost_estimate=cost,
    )(x2)
    # Leading size-1 axis is a metadata-only reshape.
    return out2[None, :, :]


def add_color_channel(img, *, block_h=1024, block_w=128, row_chunk=256):
    """Pallas equivalent of AddColorChannel.forward."""
    if img.ndim < 2:
        raise ValueError("error, dimension lower than 2 for image")
    if img.ndim == 2:
        # Zero-copy: just add the leading color axis (no kernel needed).
        return img[None, :, :]
    if img.ndim > 3:
        # Rare path; matches torch img[:, :, 0][None] exactly via plain XLA.
        return img[:, :, 0][None, ...]
    if img.shape[-1] == 1:
        # Dropping a trailing size-1 channel axis is also a free reshape.
        return img[:, :, 0][None, :, :]
    return _add_color_channel_3d(img, block_h=block_h, block_w=block_w,
                                 row_chunk=row_chunk)


if __name__ == "__main__":
    key = jax.random.PRNGKey(0)
    k1, k2, k3 = jax.random.split(key, 3)

    # Case 1: small HWC image (single tile).
    H, W, C = 16, 16, 3
    img3 = jax.random.normal(k1, (H, W, C), dtype=jnp.float32)
    out3 = jax.block_until_ready(add_color_channel(img3))
    ref3 = img3[:, :, 0][None, :, :]
    assert out3.shape == (1, H, W), out3.shape
    assert jnp.allclose(out3, ref3, rtol=1e-5, atol=1e-5), "3D path mismatch"

    # Case 2: W > 128 and not a multiple of 128 -> multi-block grid with a
    # ragged, masked last lane tile.
    H2, W2, C2 = 40, 144, 3
    img3b = jax.random.normal(k2, (H2, W2, C2), dtype=jnp.float32)
    out3b = jax.block_until_ready(add_color_channel(img3b))
    ref3b = img3b[:, :, 0][None, :, :]
    assert out3b.shape == (1, H2, W2), out3b.shape
    assert jnp.allclose(out3b, ref3b, rtol=1e-5, atol=1e-5), "ragged path mismatch"

    # Case 3: plain 2-D grayscale image (kernel-free, zero-copy reshape).
    img2 = jax.random.normal(k3, (H, W), dtype=jnp.float32)
    out2 = jax.block_until_ready(add_color_channel(img2))
    assert out2.shape == (1, H, W), out2.shape
    assert jnp.allclose(out2, img2[None, :, :]), "2D path mismatch"

    print("KERNEL_OK")
</pallas_src>

<mosaic_0001>
module attributes {stable_mosaic.version = 11 : i64} {
  func.func @_select_channel0_kernel(%arg0: i32, %arg1: i32, %arg2: memref<16x48xf32, #tpu.memory_space<vmem>>, %arg3: memref<16x16xf32, #tpu.memory_space<vmem>>) attributes {dimension_semantics = [#tpu.dimension_semantics<parallel>, #tpu.dimension_semantics<parallel>], iteration_bounds = array<i64: 1, 1>, scalar_prefetch = 0 : i64, scratch_operands = 0 : i64, tpu.core_type = #tpu.core_type<tc>, window_params = [{transform_indices = @transform_0, window_bounds = array<i64: 16, 48>}, {transform_indices = @transform_1, window_bounds = array<i64: 16, 16>}]} {
    %0 = tpu.iota {dimensions = array<i32: 0>} : vector<48x16xi32>
    %1 = tpu.iota {dimensions = array<i32: 1>} : vector<48x16xi32>
    %c3_i32 = arith.constant 3 : i32
    %2 = vector.broadcast %c3_i32 : i32 to vector<48x16xi32>
    %3 = arith.muli %1, %2 : vector<48x16xi32>
    %4 = arith.cmpi eq, %0, %3 : vector<48x16xi32>
    %5 = arith.extui %4 : vector<48x16xi1> to vector<48x16xi32>
    %6 = arith.sitofp %5 : vector<48x16xi32> to vector<48x16xf32>
    %c0 = arith.constant 0 : index
    %c0_0 = arith.constant 0 : index
    %7 = vector.load %arg2[%c0, %c0_0] : memref<16x48xf32, #tpu.memory_space<vmem>>, vector<16x48xf32>
    %cst = arith.constant dense<0.000000e+00> : vector<16x16xf32>
    %8 = tpu.matmul %7, %6, %cst {dimension_numbers = #tpu.dot_dimension_numbers<[1], [0], [0], [1], [0, 0, 1, 1], [], []>, precision = #tpu.contract_precision<fp32>} : vector<16x48xf32>, vector<48x16xf32>, vector<16x16xf32> -> vector<16x16xf32>
    %c0_1 = arith.constant 0 : index
    %c0_2 = arith.constant 0 : index
    %9 = vector.load %arg3[%c0_1, %c0_2] : memref<16x16xf32, #tpu.memory_space<vmem>>, vector<16x16xf32>
    tpu.vector_store %arg3[%c0_1, %c0_2], %8 {strides = array<i32>} : memref<16x16xf32, #tpu.memory_space<vmem>>, vector<16x16xf32>,
    return
  }
  func.func @transform_0(%arg0: i32, %arg1: i32) -> (i32, i32) {
    %c0_i32 = arith.constant 0 : i32
    return %arg0, %arg1 : i32, i32
  }
  func.func @transform_1(%arg0: i32, %arg1: i32) -> (i32, i32) {
    %c0_i32 = arith.constant 0 : i32
    return %arg0, %arg1 : i32, i32
  }
}

</mosaic_0001>

<bundles_post_ra>
// kernel: tpu_custom_call.1
= control target key start
LH: loop header
LB: loop body
LE: loop exit
PB: predicated region body
PF: predicated region fallthrough
CT: control target
= control target key end

     0   :  { %6 = vsyncpa [#allocation3], 0  ;;  %s1100_s0 = inlined_call_operand.hbm [shape: f32[16,48], index: 0, kind: input, shape index: {}]   ;;  %s1101_s1 = inlined_call_operand.hbm [shape: f32[16,16], index: 1, kind: output, shape index: {}]  }
   0x1   :  { %7 = vsyncpa [#allocation4], 0  ;;  %s932_s6 = smov [#allocation2]   ;;  %s884_s10 = scalar_lea.hbm %s1100_s0, 256 }
   0x2   :  { %s13_s7 = sshll.u32 %s932_s6, 4  ;;  %p885_p0 = scmp.ne.s32.totalorder %s1100_s0, %s884_s10  ;;  %s14_s7 = int_to_ptr.vmem [resolvable:$true] %s13_s7 }
   0x3   :  { %p888_p1 = scmp.lt.u32.totalorder %s884_s10, %s1100_s0 }
   0x5   :  { %p890_p2 = pnand %p888_p1, %p885_p0 }
   0x7   :  { %893 = shalt.err (!%p890_p2)
}
   0x8   :  { %s894_s15 = scalar_lea.vmem %s14_s7, 256  ;;  %p899_p4 = scmp.lt.s32.totalorder %s14_s7, %s14_s7 }
   0x9   :  { %p895_p3 = scmp.ne.s32.totalorder %s14_s7, %s894_s15  ;;  %p900_p5 = scmp.lt.s32.totalorder %s894_s15, %s894_s15 }
   0xb   :  { %p901_p6 = por %p900_p5, %p899_p4 }
   0xd   :  { %p902_p7 = pnand %p901_p6, %p895_p3 }
   0xf   :  { %905 = shalt.err (!%p902_p7)
}
  0x10   :  { %s933_s16 = smov 128   ;;  %s934_s17 = smov 8  }
  0x11   :  { %19 = dma.hbm_to_vmem [thread:$0]  %s1100_s0, 256, %s14_s7, [#allocation3], %s933_s16, %s933_s16, %s934_s17  }
  0x12   :  { %928 = dma.done.wait [#allocation3], 256  }
  0x13   :  { %929 = vsyncadd [#allocation3], 4294967040  ;;  %v23_v0 = vlaneseq  ;;  %vm53_vm0 = vcmask 392192   ;;  %v935_v9 = vmov 0.0   ;;  %v51_v15 = vld [vmem:[#allocation2] sm:$0xff]  ;;  %v52_v16 = vld [vmem:[#allocation2 + $0x8] sm:$0xff] }
  0x14   :  { %v936_v17 = vmov 1.0|1.0   ;;  %v55_v22 = vsel %vm53_vm0, %v51_v15, 0  ;;  %v58_v24 = vsel %vm53_vm0, %v52_v16, 0  ;;  %s937_s0 = smov [#allocation5]   ;;  %vm614_vm10 = vcmask 130048  }
  0x15   :  { %v24_v1 = vshrl.u32 %v23_v0, 7  ;;  %v31_v2 = vand.u32 127, %v23_v0  ;;  %v1001_v27 = vand.u32 4294901760, %v55_v22  ;;  %v1003_v28 = vand.u32 4294901760, %v58_v24  ;;  %s622_s20 = sshll.u32 %s937_s0, 4  ;;  %s623_s20 = int_to_ptr.vmem [resolvable:$true] %s622_s20 }
  0x16   :  { %s906_s21 = scalar_lea.vmem %s623_s20, 256  ;;  %p911_p9 = scmp.lt.s32.totalorder %s623_s20, %s623_s20 }
  0x17   :  { %v25_v3 = vadd.s32 8, %v24_v1  ;;  %v32_v4 = vmul.u32 3, %v31_v2  ;;  %v26_v5 = vadd.s32 16, %v24_v1  ;;  %v27_v6 = vadd.s32 24, %v24_v1  ;;  %p907_p8 = scmp.ne.s32.totalorder %s623_s20, %s906_s21  ;;  %p912_p10 = scmp.lt.s32.totalorder %s906_s21, %s906_s21 }
  0x18   :  { %v28_v7 = vadd.s32 32, %v24_v1  ;;  %v29_v8 = vadd.s32 40, %v24_v1  ;;  %v1016_v34 = vsub.f32 %v55_v22, %v1001_v27  ;;  %v1019_v35 = vsub.f32 %v58_v24, %v1003_v28 }
  0x19   :  { %vm33_vm1 = vcmp.eq.s32.totalorder %v24_v1, %v32_v4  ;;  %vm34_vm2 = vcmp.eq.s32.totalorder %v25_v3, %v32_v4  ;;  %vm35_vm3 = vcmp.eq.s32.totalorder %v26_v5, %v32_v4  ;;  %vm36_vm4 = vcmp.eq.s32.totalorder %v27_v6, %v32_v4  ;;  %p913_p11 = por %p912_p10, %p911_p9 }
  0x1a   :  { %v634_v10 = vsel %vm33_vm1, 1.0, %v935_v9  ;;  %v635_v11 = vsel %vm34_vm2, 1.0, %v935_v9  ;;  %vm963_vm5 = vmpackc.low %vm34_vm2, %vm33_vm1  ;;  %v636_v13 = vsel %vm35_vm3, 1.0, %v935_v9  ;;  %v637_v14 = vsel %vm36_vm4, 1.0, %v935_v9 }
  0x1b   :  { %797 = vmatprep.subr.msk.bf16.mxu1 %vm963_vm5, %v936_v17  ;;  %v971_v18 = vsub.f32 %v634_v10, %v634_v10  ;;  %v973_v19 = vsub.f32 %v635_v11, %v635_v11  ;;  %833 = vmatprep.subr.msk.bf16.mxu0 %vm963_vm5, %v936_v17  ;;  %vm979_vm6 = vmpackc.low %vm36_vm4, %vm35_vm3  ;;  %v983_v21 = vsub.f32 %v636_v13, %v636_v13  ;;  %v133_v42 = vand.u32 4294901760, %v1016_v34  ;;  %p914_p12 = pnand %p913_p11, %p907_p8 }
  0x1c   :  { %799 = vmatpush3.bf16.msk.msra.mxu1 %vm963_vm5, %v936_v17  ;;  %835 = vmatpush3.bf16.msk.msra.mxu0 %vm963_vm5, %v936_v17  ;;  %v992_v23 = vsub.f32 %v637_v14, %v637_v14  ;;  %vm37_vm7 = vcmp.eq.s32.totalorder %v28_v7, %v32_v4  ;;  %vm38_vm8 = vcmp.eq.s32.totalorder %v29_v8, %v32_v4  ;;  %v143_v43 = vand.u32 4294901760, %v1019_v35 }
  0x1d   :  { %801 = vmatprep.subr.msk.bf16.mxu1 %vm979_vm6, %v936_v17  ;;  %837 = vmatprep.subr.msk.bf16.mxu0 %vm979_vm6, %v936_v17  ;;  %v638_v25 = vsel %vm37_vm7, 1.0, %v935_v9  ;;  %v639_v26 = vsel %vm38_vm8, 1.0, %v935_v9  ;;  %vm1005_vm9 = vmpackc.low %vm38_vm8, %vm37_vm7  ;;  %v154_v32 = vand.u32 4294901760, %v971_v18  ;;  %v161_v33 = vand.u32 4294901760, %v973_v19 }
  0x1e   :  { %v1009_v30 = vsub.f32 %v638_v25, %v638_v25  ;;  %v1011_v31 = vsub.f32 %v639_v26, %v639_v26  ;;  %v168_v36 = vand.u32 4294901760, %v983_v21  ;;  %v175_v37 = vand.u32 4294901760, %v992_v23  ;;  %763 = vmatprep.mubr.f32.mxu0 %v133_v42 }
  0x1f   :  { %v155_v38 = vsub.f32 %v971_v18, %v154_v32  ;;  %v162_v39 = vsub.f32 %v973_v19, %v161_v33  ;;  %v844_v40 = vpack.c.bf16 %v161_v33, %v154_v32  ;;  %v134_v49 = vsub.f32 %v1016_v34, %v133_v42 }
  0x20   :  { %803 = vmatpush3.bf16.msk.msra.mxu1 %vm979_vm6, %v936_v17  ;;  %839 = vmatpush3.bf16.msk.msra.mxu0 %vm979_vm6, %v936_v17  ;;  %v182_v41 = vand.u32 4294901760, %v1009_v30  ;;  %v169_v44 = vsub.f32 %v983_v21, %v168_v36  ;;  %v176_v45 = vsub.f32 %v992_v23, %v175_v37  ;;  %v144_v50 = vsub.f32 %v1019_v35, %v143_v43 }
  0x21   :  { %805 = vmatprep.subr.msk.bf16.mxu1 %vm1005_vm9, %v936_v17  ;;  %841 = vmatprep.subr.msk.bf16.mxu0 %vm1005_vm9, %v936_v17  ;;  %v156_v46 = vand.u32 4294901760, %v155_v38  ;;  %v163_v47 = vand.u32 4294901760, %v162_v39  ;;  %v189_v54 = vand.u32 4294901760, %v1011_v31  ;;  %v135_v55 = vand.u32 4294901760, %v134_v49 }
  0x22   :  { %v183_v48 = vsub.f32 %v1009_v30, %v182_v41  ;;  %v170_v51 = vand.u32 4294901760, %v169_v44  ;;  %v177_v52 = vand.u32 4294901760, %v176_v45  ;;  %v145_v56 = vand.u32 4294901760, %v144_v50 }
  0x23   :  { %v808_v53 = vpack.c.bf16 %v163_v47, %v156_v46  ;;  %v848_v57 = vpack.c.bf16 %v175_v37, %v168_v36  ;;  %v190_v60 = vsub.f32 %v1011_v31, %v189_v54  ;;  %718 = vmatprep.mubr.f32.mxu1 %v135_v55  ;;  %v852_v62 = vpack.c.bf16 %v189_v54, %v182_v41 }
  0x24   :  { %807 = vmatpush3.bf16.msk.msra.mxu1 %vm1005_vm9, %v936_v17  ;;  %843 = vmatpush3.bf16.msk.msra.mxu0 %vm1005_vm9, %v936_v17  ;;  %v812_v58 = vpack.c.bf16 %v177_v52, %v170_v51  ;;  %v184_v59 = vand.u32 4294901760, %v183_v48  ;;  %v820_v0 = vpack.c.bf16 %v973_v19, %v971_v18  ;;  %v824_v1 = vpack.c.bf16 %v992_v23, %v983_v21 }
  0x25   :  { %845 = vmatprep.subr.bf16.mxu0 %v844_v40  ;;  %809 = vmatprep.subr.bf16.mxu1 %v808_v53  ;;  %v191_v61 = vand.u32 4294901760, %v190_v60  ;;  %v828_v2 = vpack.c.bf16 %v1011_v31, %v1009_v30 }
  0x27   :  { %764 = vmatmul.mubr.f32.vlgmr.msra.gmra.mrb[0].mxu0 %v143_v43  ;;  %719 = vmatmul.mubr.f32.vlgmr.msra.gmra.mrb[0].mxu1 %v145_v56  ;;  %v816_v63 = vpack.c.bf16 %v191_v61, %v184_v59 }
  0x28   :  { %847 = vmatpush3.bf16.msra.mxu0 %v844_v40  ;;  %811 = vmatpush3.bf16.msra.mxu1 %v808_v53 }
  0x29   :  { %849 = vmatprep.subr.bf16.mxu0 %v848_v57  ;;  %813 = vmatprep.subr.bf16.mxu1 %v812_v58 }
  0x2a   :  { %733 = vmatprep.mubr.f32.mxu1 %v1001_v27  ;;  %778 = vmatprep.mubr.f32.mxu0 %v1001_v27 }
  0x2c   :  { %851 = vmatpush3.bf16.msra.mxu0 %v848_v57  ;;  %815 = vmatpush3.bf16.msra.mxu1 %v812_v58 }
  0x2d   :  { %853 = vmatprep.subr.bf16.mxu0 %v852_v62  ;;  %817 = vmatprep.subr.bf16.mxu1 %v816_v63 }
  0x30   :  { %855 = vmatpush3.bf16.msra.mxu0 %v852_v62  ;;  %819 = vmatpush3.bf16.msra.mxu1 %v816_v63 }
  0x31   :  { %857 = vmatprep.subr.msk.bf16.mxu0 %vm963_vm5, %v936_v17  ;;  %821 = vmatprep.subr.bf16.mxu1 %v820_v0 }
  0x33   :  { %779 = vmatmul.mubr.f32.vlgmr.msra.gmra.mrb[0].mxu0 %v1003_v28  ;;  %734 = vmatmul.mubr.f32.vlgmr.msra.gmra.mrb[0].mxu1 %v1003_v28 }
  0x34   :  { %859 = vmatpush3.bf16.msk.msra.mxu0 %vm963_vm5, %v936_v17  ;;  %823 = vmatpush3.bf16.msra.mxu1 %v820_v0 }
  0x35   :  { %861 = vmatprep.subr.msk.bf16.mxu0 %vm979_vm6, %v936_v17  ;;  %825 = vmatprep.subr.bf16.mxu1 %v824_v1 }
  0x36   :  { %748 = vmatprep.mubr.f32.mxu1 %v1016_v34  ;;  %793 = vmatprep.mubr.f32.mxu0 %v1001_v27 }
  0x38   :  { %863 = vmatpush3.bf16.msk.msra.mxu0 %vm979_vm6, %v936_v17  ;;  %827 = vmatpush3.bf16.msra.mxu1 %v824_v1 }
  0x39   :  { %865 = vmatprep.subr.msk.bf16.mxu0 %vm1005_vm9, %v936_v17  ;;  %829 = vmatprep.subr.bf16.mxu1 %v828_v2 }
  0x3c   :  { %867 = vmatpush3.bf16.msk.msra.mxu0 %vm1005_vm9, %v936_v17  ;;  %831 = vmatpush3.bf16.msra.mxu1 %v828_v2 }
  0x3f   :  { %794 = vmatmul.mubr.f32.vlgmr.msra.gmra.mrb[0].mxu0 %v1003_v28  ;;  %749 = vmatmul.mubr.f32.vlgmr.msra.gmra.mrb[0].mxu1 %v1019_v35 }
 0x112   :  { %v795_v3 = vpop.f32.mrb[0].mxu0  ;;  %v750_v4 = vpop.f32.mrb[0].mxu1 }
 0x113   :  { %v604_v5 = vpop.f32.mrb[1].mxu0  ;;  %v868_v6 = vadd.f32 %v795_v3, %v750_v4  ;;  %v338_v7 = vpop.f32.mrb[1].mxu1 }
 0x114   :  { %v869_v8 = vadd.f32 %v604_v5, %v338_v7 }
 0x115   :  { %616 = vst.msk [vmem:[#allocation5 + $0x8] sm:$0xff] %vm614_vm10, %v868_v6 }
 0x116   :  { %615 = vst.msk [vmem:[#allocation5] sm:$0xff] %vm614_vm10, %v869_v8 }
 0x117   :  { %917 = shalt.err (!%p914_p12)
}
 0x118   :  { %s918_s24 = scalar_lea.hbm %s1101_s1, 256 }
 0x119   :  { %p919_p13 = scmp.ne.s32.totalorder %s1101_s1, %s918_s24  ;;  %p922_p0 = scmp.lt.u32.totalorder %s918_s24, %s1101_s1 }
 0x11b   :  { %p924_p1 = pnand %p922_p0, %p919_p13 }
 0x11d   :  { %927 = shalt.err (!%p924_p1)
}
 0x11e   :  { %628 = dma.vmem_to_hbm [thread:$0]  %s623_s20, 256, %s1101_s1, [#allocation4], %s933_s16, %s933_s16, %s934_s17  }
 0x11f   :  { %930 = dma.done.wait [#allocation4], 256  }
 0x120   :  { %931 = vsyncadd [#allocation4], 4294967040 }
 0x121   :  { %632 = vsyncpa [#allocation3], 1 }
 0x122   :  { %633 = vsyncpa [#allocation4], 1 }

</bundles_post_ra>
